<compile_context>
chip_gen: v7x
topology: tpu7x:2x2x1
jax: 0.10.0
libtpu: 0.0.40
codegen_flags: <defaults>
</compile_context>

<pallas_src>
import functools

import jax
import jax.numpy as jnp
from jax import lax
from jax.experimental import pallas as pl
from jax.experimental.pallas import tpu as pltpu

N_FEATURES = 3
NEG_SLOPE = 0.2


def _leaky(a):
    return jnp.where(a >= 0.0, a, NEG_SLOPE * a)


# ----------------------------------------------------------------------------
# Fused forward kernel: pointwise chains + 3 strided convs + linear head.
# ----------------------------------------------------------------------------
def _disc_kernel(x_ref, w1_ref, b1_ref, w2_ref, b2_ref, w3_ref, b3_ref,
                 wc1_ref, bc1_ref, wc2_ref, bc2_ref, wc3_ref, bc3_ref,
                 wl_ref, sel_ref, bl_ref,
                 o_ref,
                 h1_ref, h2_ref, h3_ref,
                 *, bb, L, c_cat, c_mid):
    """One grid step processes `bb` samples.

    x_ref    : (bb*L, c_in)   row-major (sample, position) x channels, f32
    w?_ref   : block-diagonal fused pointwise weights (bf16); b?_ref (1, c) f32
    wc?_ref  : (4*c_in, c_out) tap-stacked strided-conv weights (bf16)
    wl_ref   : (bb*(L3+1), c_mid) lin0 weights tiled per sample, garbage rows 0
    sel_ref  : (bb, bb*(L3+1)) 0/1 per-sample row-selection matrix (f32)
    o_ref    : (1, bb, 1) logits for this grid step
    h?_ref   : zero-padded VMEM scratch, per-sample stride Li+2 (+2 tail rows);
               pad rows implement the conv padding=1, and only those rows are
               re-zeroed each step.
    """
    f32 = jnp.float32
    bf16 = jnp.bfloat16
    L1, L2, L3 = L // 2, L // 4, L // 8

    # ---- zero only the pad / tail rows of the padded scratch buffers --------
    def zero_pads(ref, Li, c):
        Lp = Li + 2
        z1 = jnp.zeros((1, c), f32)
        z2 = jnp.zeros((2, c), f32)
        z3 = jnp.zeros((3, c), f32)
        ref[pl.ds(0, 1), :] = z1                              # front pad, sample 0
        for bi in range(bb - 1):                              # back pad bi + front pad bi+1
            ref[pl.ds(bi * Lp + Li + 1, 2), :] = z2
        ref[pl.ds((bb - 1) * Lp + Li + 1, 3), :] = z3         # last back pad + 2 tail rows

    zero_pads(h1_ref, L, c_cat)
    zero_pads(h2_ref, L1, c_mid)
    zero_pads(h3_ref, L2, c_mid)

    # ---- fused pointwise branches (p | w), all bb*L rows in one chain -------
    h = x_ref[...].astype(bf16)
    h = _leaky(jnp.dot(h, w1_ref[...], preferred_element_type=f32) + b1_ref[...])
    h = _leaky(jnp.dot(h.astype(bf16), w2_ref[...], preferred_element_type=f32) + b2_ref[...])
    h = _leaky(jnp.dot(h.astype(bf16), w3_ref[...], preferred_element_type=f32) + b3_ref[...])
    # h: (bb*L, c_cat) f32  == torch.cat([p, w], dim=1) in (sample, pos) x channel form

    def store_padded(dst_ref, src, Li, src_stride):
        """Write each sample's Li valid rows into the padded buffer (stride Li+2)."""
        Lp = Li + 2
        for bi in range(bb):
            dst_ref[pl.ds(bi * Lp + 1, Li), :] = src[bi * src_stride:bi * src_stride + Li, :]

    def conv_k4s2(hin_ref, Li, wc_ref, bc_ref, c_in):
        """Batched conv(k=4, s=2, p=1): 4 tap matmuls over ALL samples at once.

        Output row m = bi*(Lo+1) + j; j in [0, Lo) are sample bi's outputs,
        j == Lo is a garbage row that downstream code discards / zero-masks.
        """
        Lo = Li // 2
        M = bb * (Lo + 1)
        acc = bc_ref[...]                                     # (1, c_out), broadcasts
        for k in range(4):
            tap = hin_ref[pl.ds(k, M, 2), :].astype(bf16)     # (M, c_in)
            w_k = wc_ref[pl.ds(k * c_in, c_in), :]            # (c_in, c_out)
            acc = acc + jnp.dot(tap, w_k, preferred_element_type=f32)
        return _leaky(acc)                                    # (M, c_out)

    store_padded(h1_ref, h, L, L)
    a1 = conv_k4s2(h1_ref, L, wc1_ref, bc1_ref, c_cat)        # (bb*(L1+1), c_mid)
    store_padded(h2_ref, a1, L1, L1 + 1)
    a2 = conv_k4s2(h2_ref, L1, wc2_ref, bc2_ref, c_mid)       # (bb*(L2+1), c_mid)
    store_padded(h3_ref, a2, L2, L2 + 1)
    a3 = conv_k4s2(h3_ref, L2, wc3_ref, bc3_ref, c_mid)       # (bb*(L3+1), c_mid)

    # ---- lin0 head, batched over the whole step ------------------------------
    prod = a3 * wl_ref[...]                                   # garbage rows hit zero weights
    y_mat = jnp.dot(sel_ref[...], prod, preferred_element_type=f32)   # (bb, c_mid)
    y = jnp.sum(y_mat, axis=1, keepdims=True) + bl_ref[...]            # (bb, 1)
    o_ref[...] = y[None]                                      # single (1, bb, 1) store


# ----------------------------------------------------------------------------
# Weight fusion (done once in the wrapper, tiny arrays)
# ----------------------------------------------------------------------------
def _block_diag(a, b):
    ra, ca = a.shape
    rb, cb = b.shape
    top = jnp.concatenate([a, jnp.zeros((ra, cb), a.dtype)], axis=1)
    bot = jnp.concatenate([jnp.zeros((rb, ca), b.dtype), b], axis=1)
    return jnp.concatenate([top, bot], axis=0)


def _fuse_params(params, ndf, seq_len):
    c_mid = 8 * ndf
    l3 = seq_len // 8
    bf16, f32 = jnp.bfloat16, jnp.float32

    def pw(name):  # (Cout, Cin, 1) -> (Cin, Cout)
        return jnp.transpose(params[name][:, :, 0])

    w1 = _block_diag(pw("convp1_w"), pw("convw1_w")).astype(bf16)
    w2 = _block_diag(pw("convp2_w"), pw("convw2_w")).astype(bf16)
    w3 = _block_diag(pw("convp3_w"), pw("convw3_w")).astype(bf16)
    b1 = jnp.concatenate([params["convp1_b"], params["convw1_b"]]).reshape(1, -1).astype(f32)
    b2 = jnp.concatenate([params["convp2_b"], params["convw2_b"]]).reshape(1, -1).astype(f32)
    b3 = jnp.concatenate([params["convp3_b"], params["convw3_b"]]).reshape(1, -1).astype(f32)

    def taps(name):  # (Cout, Cin, 4) -> (4*Cin, Cout), tap-major rows
        w = params[name]
        return jnp.transpose(w, (2, 1, 0)).reshape(4 * w.shape[1], w.shape[0]).astype(bf16)

    wc1, wc2, wc3 = taps("conv1_w"), taps("conv2_w"), taps("conv3_w")
    bc1 = params["conv1_b"].reshape(1, -1).astype(f32)
    bc2 = params["conv2_b"].reshape(1, -1).astype(f32)
    bc3 = params["conv3_b"].reshape(1, -1).astype(f32)

    # lin0 weight (1, c_mid*l3), flat index c*l3 + l  ->  (l3, c_mid) as (l, c)
    wl = jnp.transpose(params["lin0_w"].reshape(c_mid, l3)).astype(f32)
    bl = params["lin0_b"].reshape(1, 1).astype(f32)
    return (w1, b1, w2, b2, w3, b3, wc1, bc1, wc2, bc2, wc3, bc3, wl, bl)


def _pick_bb(B, cap=64):
    """Samples per grid step.

    Small B: aim for >=2 grid steps so both v7x TensorCores get work.
    Large B: make steps as fat as reasonable (cap=64) so single-TC v5e/v6e
    amortize per-step overhead and the tap matmuls get long M dimensions.
    Always returns a divisor of B.
    """
    if B <= 1:
        return 1
    target = min(cap, max(1, B // 2))
    for cand in range(target, 0, -1):
        if B % cand == 0:
            return cand
    return 1


# ----------------------------------------------------------------------------
# Disc.forward
# ----------------------------------------------------------------------------
@functools.partial(jax.jit, static_argnums=(2, 3, 4))
def disc_forward(params, x, ndf, seq_len, encoded_dim):
    """x: (B, n_features + encoded_dim, L) in NCL layout (matches PyTorch)."""
    B, c_in, L = x.shape
    assert c_in == N_FEATURES + encoded_dim
    assert L == seq_len and L % 8 == 0, "seq_len must be a multiple of 8"
    c_cat, c_mid = 4 * ndf, 8 * ndf
    L1, L2, L3 = L // 2, L // 4, L // 8

    (w1, b1, w2, b2, w3, b3,
     wc1, bc1, wc2, bc2, wc3, bc3, wl, bl) = _fuse_params(params, ndf, seq_len)

    bb = _pick_bb(B)
    grid_n = B // bb
    lp3 = L3 + 1
    m3 = bb * lp3

    # lin0 weights tiled per sample with a zero row masking each garbage row.
    wl_block = jnp.concatenate([wl, jnp.zeros((1, c_mid), jnp.float32)], axis=0)  # (L3+1, c_mid)
    wl_tiled = jnp.tile(wl_block, (bb, 1))                                        # (m3, c_mid)
    # 0/1 per-sample row-selection matrix for the batched head reduction.
    row_owner = jnp.arange(m3, dtype=jnp.int32) // lp3
    sel = (row_owner[None, :] == jnp.arange(bb, dtype=jnp.int32)[:, None]).astype(jnp.float32)

    # single tiny input relayout: NCL -> row-major (sample*position, channel)
    x_rows = jnp.transpose(x, (0, 2, 1)).reshape(B * L, c_in).astype(jnp.float32)

    consts = (w1, b1, w2, b2, w3, b3, wc1, bc1, wc2, bc2, wc3, bc3, wl_tiled, sel, bl)

    in_specs = [pl.BlockSpec((bb * L, c_in), lambda i: (i, 0))]
    in_specs += [pl.BlockSpec(a.shape, lambda i, nd=a.ndim: (0,) * nd) for a in consts]

    out = pl.pallas_call(
        functools.partial(_disc_kernel, bb=bb, L=L, c_cat=c_cat, c_mid=c_mid),
        out_shape=jax.ShapeDtypeStruct((grid_n, bb, 1), jnp.float32),
        grid=(grid_n,),
        in_specs=in_specs,
        out_specs=pl.BlockSpec((1, bb, 1), lambda i: (i, 0, 0)),
        scratch_shapes=[
            # per-sample stride Li+2 (even), plus 2 tail rows so the k=2,3
            # strided tap reads stay inside the allocation.
            pltpu.VMEM((bb * (L + 2) + 2, c_cat), jnp.float32),
            pltpu.VMEM((bb * (L1 + 2) + 2, c_mid), jnp.float32),
            pltpu.VMEM((bb * (L2 + 2) + 2, c_mid), jnp.float32),
        ],
        compiler_params=pltpu.CompilerParams(
            dimension_semantics=("parallel",),
            vmem_limit_bytes=32 * 1024 * 1024),
    )(x_rows, *consts)
    return out.reshape(B)


# ----------------------------------------------------------------------------
# Parameter init (deterministic, PyTorch-like uniform(-1/sqrt(fan_in), +))
# ----------------------------------------------------------------------------
def init_params(key, ndf, seq_len, encoded_dim):
    def conv_p(k, c_out, c_in, ksize):
        kw, kb = jax.random.split(k)
        bound = 1.0 / jnp.sqrt(c_in * ksize)
        W = jax.random.uniform(kw, (c_out, c_in, ksize), jnp.float32, -bound, bound)
        b = jax.random.uniform(kb, (c_out,), jnp.float32, -bound, bound)
        return W, b

    keys = jax.random.split(key, 10)
    params = {}
    params["convp1_w"], params["convp1_b"] = conv_p(keys[0], ndf, N_FEATURES, 1)
    params["convp2_w"], params["convp2_b"] = conv_p(keys[1], ndf, ndf, 1)
    params["convp3_w"], params["convp3_b"] = conv_p(keys[2], ndf, ndf, 1)
    params["convw1_w"], params["convw1_b"] = conv_p(keys[3], ndf * 3, encoded_dim, 1)
    params["convw2_w"], params["convw2_b"] = conv_p(keys[4], ndf * 3, ndf * 3, 1)
    params["convw3_w"], params["convw3_b"] = conv_p(keys[5], ndf * 3, ndf * 3, 1)
    params["conv1_w"], params["conv1_b"] = conv_p(keys[6], ndf * 8, ndf * 4, 4)
    params["conv2_w"], params["conv2_b"] = conv_p(keys[7], ndf * 8, ndf * 8, 4)
    params["conv3_w"], params["conv3_b"] = conv_p(keys[8], ndf * 8, ndf * 8, 4)
    lin_in = ndf * 8 * seq_len // 8
    kw, kb = jax.random.split(keys[9])
    bound = 1.0 / jnp.sqrt(lin_in)
    params["lin0_w"] = jax.random.uniform(kw, (1, lin_in), jnp.float32, -bound, bound)
    params["lin0_b"] = jax.random.uniform(kb, (1,), jnp.float32, -bound, bound)
    return params


# ----------------------------------------------------------------------------
# Pure-JAX reference (matches PyTorch forward), used as a sanity check.
# ----------------------------------------------------------------------------
def _conv1d_ref(x, w, b, stride, pad):
    y = lax.conv_general_dilated(
        x, w, window_strides=(stride,), padding=[(pad, pad)],
        dimension_numbers=("NCH", "OIH", "NCH"))
    return y + b[None, :, None]


def disc_reference(params, x):
    p = x[:, :N_FEATURES]
    w = x[:, N_FEATURES:]
    p = _leaky(_conv1d_ref(p, params["convp1_w"], params["convp1_b"], 1, 0))
    p = _leaky(_conv1d_ref(p, params["convp2_w"], params["convp2_b"], 1, 0))
    p = _leaky(_conv1d_ref(p, params["convp3_w"], params["convp3_b"], 1, 0))
    w = _leaky(_conv1d_ref(w, params["convw1_w"], params["convw1_b"], 1, 0))
    w = _leaky(_conv1d_ref(w, params["convw2_w"], params["convw2_b"], 1, 0))
    w = _leaky(_conv1d_ref(w, params["convw3_w"], params["convw3_b"], 1, 0))
    h = jnp.concatenate([p, w], axis=1)
    h = _leaky(_conv1d_ref(h, params["conv1_w"], params["conv1_b"], 2, 1))
    h = _leaky(_conv1d_ref(h, params["conv2_w"], params["conv2_b"], 2, 1))
    h = _leaky(_conv1d_ref(h, params["conv3_w"], params["conv3_b"], 2, 1))
    flat = h.reshape(h.shape[0], -1)
    y = flat @ params["lin0_w"].T + params["lin0_b"]
    return y[:, 0]


if __name__ == "__main__":
    ndf = 4
    seq_len = 16
    encoded_dim = 8
    batch = 2

    key = jax.random.PRNGKey(0)
    k_params, k_x = jax.random.split(key)
    params = init_params(k_params, ndf, seq_len, encoded_dim)
    x = jax.random.normal(k_x, (batch, N_FEATURES + encoded_dim, seq_len), jnp.float32)

    out = disc_forward(params, x, ndf, seq_len, encoded_dim)
    out = jax.block_until_ready(out)
    assert out.shape == (batch,), out.shape
    assert bool(jnp.all(jnp.isfinite(out)))

    # loose tolerance: kernel matmuls use bf16 operands with f32 accumulation
    ref = disc_reference(params, x)
    max_err = float(jnp.max(jnp.abs(out - ref)))
    assert max_err < 5e-2, f"mismatch vs reference: {max_err}"
    print("KERNEL_OK")
</pallas_src>

<mosaic_0001>
module attributes {stable_mosaic.version = 11 : i64} {
  func.func @_disc_kernel(%arg0: i32, %arg1: memref<16x11xf32, #tpu.memory_space<vmem>>, %arg2: memref<11x16xbf16, #tpu.memory_space<vmem>>, %arg3: memref<1x16xf32, #tpu.memory_space<vmem>>, %arg4: memref<16x16xbf16, #tpu.memory_space<vmem>>, %arg5: memref<1x16xf32, #tpu.memory_space<vmem>>, %arg6: memref<16x16xbf16, #tpu.memory_space<vmem>>, %arg7: memref<1x16xf32, #tpu.memory_space<vmem>>, %arg8: memref<64x32xbf16, #tpu.memory_space<vmem>>, %arg9: memref<1x32xf32, #tpu.memory_space<vmem>>, %arg10: memref<128x32xbf16, #tpu.memory_space<vmem>>, %arg11: memref<1x32xf32, #tpu.memory_space<vmem>>, %arg12: memref<128x32xbf16, #tpu.memory_space<vmem>>, %arg13: memref<1x32xf32, #tpu.memory_space<vmem>>, %arg14: memref<3x32xf32, #tpu.memory_space<vmem>>, %arg15: memref<1x3xf32, #tpu.memory_space<vmem>>, %arg16: memref<1x1xf32, #tpu.memory_space<vmem>>, %arg17: memref<1x1x1xf32, #tpu.memory_space<vmem>>, %arg18: memref<20x16xf32, #tpu.memory_space<vmem>>, %arg19: memref<12x32xf32, #tpu.memory_space<vmem>>, %arg20: memref<8x32xf32, #tpu.memory_space<vmem>>) attributes {dimension_semantics = [#tpu.dimension_semantics<parallel>], iteration_bounds = array<i64: 2>, scalar_prefetch = 0 : i64, scratch_operands = 3 : i64, tpu.core_type = #tpu.core_type<tc>, window_params = [{transform_indices = @transform_0, window_bounds = array<i64: 16, 11>}, {pipeline_mode = #tpu.pipeline_mode<synchronous>, transform_indices = @transform_1, window_bounds = array<i64: 11, 16>}, {pipeline_mode = #tpu.pipeline_mode<synchronous>, transform_indices = @transform_2, window_bounds = array<i64: 1, 16>}, {pipeline_mode = #tpu.pipeline_mode<synchronous>, transform_indices = @transform_3, window_bounds = array<i64: 16, 16>}, {pipeline_mode = #tpu.pipeline_mode<synchronous>, transform_indices = @transform_4, window_bounds = array<i64: 1, 16>}, {pipeline_mode = #tpu.pipeline_mode<synchronous>, transform_indices = @transform_5, window_bounds = array<i64: 16, 16>}, {pipeline_mode = #tpu.pipeline_mode<synchronous>, transform_indices = @transform_6, window_bounds = array<i64: 1, 16>}, {pipeline_mode = #tpu.pipeline_mode<synchronous>, transform_indices = @transform_7, window_bounds = array<i64: 64, 32>}, {pipeline_mode = #tpu.pipeline_mode<synchronous>, transform_indices = @transform_8, window_bounds = array<i64: 1, 32>}, {pipeline_mode = #tpu.pipeline_mode<synchronous>, transform_indices = @transform_9, window_bounds = array<i64: 128, 32>}, {pipeline_mode = #tpu.pipeline_mode<synchronous>, transform_indices = @transform_10, window_bounds = array<i64: 1, 32>}, {pipeline_mode = #tpu.pipeline_mode<synchronous>, transform_indices = @transform_11, window_bounds = array<i64: 128, 32>}, {pipeline_mode = #tpu.pipeline_mode<synchronous>, transform_indices = @transform_12, window_bounds = array<i64: 1, 32>}, {pipeline_mode = #tpu.pipeline_mode<synchronous>, transform_indices = @transform_13, window_bounds = array<i64: 3, 32>}, {pipeline_mode = #tpu.pipeline_mode<synchronous>, transform_indices = @transform_14, window_bounds = array<i64: 1, 3>}, {pipeline_mode = #tpu.pipeline_mode<synchronous>, transform_indices = @transform_15, window_bounds = array<i64: 1, 1>}, {transform_indices = @transform_16, window_bounds = array<i64: 1, 1, 1>}]} {
    %cst = arith.constant 0.000000e+00 : f32
    %0 = vector.broadcast %cst : f32 to vector<1x16xf32>
    %cst_0 = arith.constant 0.000000e+00 : f32
    %1 = vector.broadcast %cst_0 : f32 to vector<3x16xf32>
    %c0 = arith.constant 0 : index
    %c0_1 = arith.constant 0 : index
    %2 = vector.load %arg18[%c0, %c0_1] : memref<20x16xf32, #tpu.memory_space<vmem>>, vector<1x16xf32>
    tpu.vector_store %arg18[%c0, %c0_1], %0 {strides = array<i32>} : memref<20x16xf32, #tpu.memory_space<vmem>>, vector<1x16xf32>,
    %c17 = arith.constant 17 : index
    %c0_2 = arith.constant 0 : index
    %3 = vector.load %arg18[%c17, %c0_2] : memref<20x16xf32, #tpu.memory_space<vmem>>, vector<3x16xf32>
    tpu.vector_store %arg18[%c17, %c0_2], %1 {strides = array<i32>} : memref<20x16xf32, #tpu.memory_space<vmem>>, vector<3x16xf32>,
    %cst_3 = arith.constant 0.000000e+00 : f32
    %4 = vector.broadcast %cst_3 : f32 to vector<1x32xf32>
    %cst_4 = arith.constant 0.000000e+00 : f32
    %5 = vector.broadcast %cst_4 : f32 to vector<3x32xf32>
    %c0_5 = arith.constant 0 : index
    %c0_6 = arith.constant 0 : index
    %6 = vector.load %arg19[%c0_5, %c0_6] : memref<12x32xf32, #tpu.memory_space<vmem>>, vector<1x32xf32>
    tpu.vector_store %arg19[%c0_5, %c0_6], %4 {strides = array<i32>} : memref<12x32xf32, #tpu.memory_space<vmem>>, vector<1x32xf32>,
    %c9 = arith.constant 9 : index
    %c0_7 = arith.constant 0 : index
    %7 = vector.load %arg19[%c9, %c0_7] : memref<12x32xf32, #tpu.memory_space<vmem>>, vector<3x32xf32>
    tpu.vector_store %arg19[%c9, %c0_7], %5 {strides = array<i32>} : memref<12x32xf32, #tpu.memory_space<vmem>>, vector<3x32xf32>,
    %cst_8 = arith.constant 0.000000e+00 : f32
    %8 = vector.broadcast %cst_8 : f32 to vector<1x32xf32>
    %cst_9 = arith.constant 0.000000e+00 : f32
    %9 = vector.broadcast %cst_9 : f32 to vector<3x32xf32>
    %c0_10 = arith.constant 0 : index
    %c0_11 = arith.constant 0 : index
    %10 = vector.load %arg20[%c0_10, %c0_11] : memref<8x32xf32, #tpu.memory_space<vmem>>, vector<1x32xf32>
    tpu.vector_store %arg20[%c0_10, %c0_11], %8 {strides = array<i32>} : memref<8x32xf32, #tpu.memory_space<vmem>>, vector<1x32xf32>,
    %c5 = arith.constant 5 : index
    %c0_12 = arith.constant 0 : index
    %11 = vector.load %arg20[%c5, %c0_12] : memref<8x32xf32, #tpu.memory_space<vmem>>, vector<3x32xf32>
    tpu.vector_store %arg20[%c5, %c0_12], %9 {strides = array<i32>} : memref<8x32xf32, #tpu.memory_space<vmem>>, vector<3x32xf32>,
    %c0_13 = arith.constant 0 : index
    %c0_14 = arith.constant 0 : index
    %12 = vector.load %arg1[%c0_13, %c0_14] : memref<16x11xf32, #tpu.memory_space<vmem>>, vector<16x11xf32>
    %13 = arith.truncf %12 : vector<16x11xf32> to vector<16x11xbf16>
    %c0_15 = arith.constant 0 : index
    %c0_16 = arith.constant 0 : index
    %14 = vector.load %arg2[%c0_15, %c0_16] : memref<11x16xbf16, #tpu.memory_space<vmem>>, vector<11x16xbf16>
    %cst_17 = arith.constant dense<0.000000e+00> : vector<16x16xf32>
    %15 = tpu.matmul %13, %14, %cst_17 {dimension_numbers = #tpu.dot_dimension_numbers<[1], [0], [0], [1], [0, 0, 1, 1], [], []>} : vector<16x11xbf16>, vector<11x16xbf16>, vector<16x16xf32> -> vector<16x16xf32>
    %c0_18 = arith.constant 0 : index
    %c0_19 = arith.constant 0 : index
    %16 = vector.load %arg3[%c0_18, %c0_19] : memref<1x16xf32, #tpu.memory_space<vmem>>, vector<1x16xf32>
    %17 = vector.broadcast %16 : vector<1x16xf32> to vector<16x16xf32>
    %18 = arith.addf %15, %17 : vector<16x16xf32>
    %cst_20 = arith.constant 0.000000e+00 : f32
    %19 = vector.broadcast %cst_20 : f32 to vector<16x16xf32>
    %20 = arith.cmpf oge, %18, %19 : vector<16x16xf32>
    %cst_21 = arith.constant 2.000000e-01 : f32
    %21 = vector.broadcast %cst_21 : f32 to vector<16x16xf32>
    %22 = arith.mulf %21, %18 : vector<16x16xf32>
    %23 = arith.select %20, %18, %22 : vector<16x16xi1>, vector<16x16xf32>
    %24 = arith.truncf %23 : vector<16x16xf32> to vector<16x16xbf16>
    %c0_22 = arith.constant 0 : index
    %c0_23 = arith.constant 0 : index
    %25 = vector.load %arg4[%c0_22, %c0_23] : memref<16x16xbf16, #tpu.memory_space<vmem>>, vector<16x16xbf16>
    %cst_24 = arith.constant dense<0.000000e+00> : vector<16x16xf32>
    %26 = tpu.matmul %24, %25, %cst_24 {dimension_numbers = #tpu.dot_dimension_numbers<[1], [0], [0], [1], [0, 0, 1, 1], [], []>} : vector<16x16xbf16>, vector<16x16xbf16>, vector<16x16xf32> -> vector<16x16xf32>
    %c0_25 = arith.constant 0 : index
    %c0_26 = arith.constant 0 : index
    %27 = vector.load %arg5[%c0_25, %c0_26] : memref<1x16xf32, #tpu.memory_space<vmem>>, vector<1x16xf32>
    %28 = vector.broadcast %27 : vector<1x16xf32> to vector<16x16xf32>
    %29 = arith.addf %26, %28 : vector<16x16xf32>
    %cst_27 = arith.constant 0.000000e+00 : f32
    %30 = vector.broadcast %cst_27 : f32 to vector<16x16xf32>
    %31 = arith.cmpf oge, %29, %30 : vector<16x16xf32>
    %cst_28 = arith.constant 2.000000e-01 : f32
    %32 = vector.broadcast %cst_28 : f32 to vector<16x16xf32>
    %33 = arith.mulf %32, %29 : vector<16x16xf32>
    %34 = arith.select %31, %29, %33 : vector<16x16xi1>, vector<16x16xf32>
    %35 = arith.truncf %34 : vector<16x16xf32> to vector<16x16xbf16>
    %c0_29 = arith.constant 0 : index
    %c0_30 = arith.constant 0 : index
    %36 = vector.load %arg6[%c0_29, %c0_30] : memref<16x16xbf16, #tpu.memory_space<vmem>>, vector<16x16xbf16>
    %cst_31 = arith.constant dense<0.000000e+00> : vector<16x16xf32>
    %37 = tpu.matmul %35, %36, %cst_31 {dimension_numbers = #tpu.dot_dimension_numbers<[1], [0], [0], [1], [0, 0, 1, 1], [], []>} : vector<16x16xbf16>, vector<16x16xbf16>, vector<16x16xf32> -> vector<16x16xf32>
    %c0_32 = arith.constant 0 : index
    %c0_33 = arith.constant 0 : index
    %38 = vector.load %arg7[%c0_32, %c0_33] : memref<1x16xf32, #tpu.memory_space<vmem>>, vector<1x16xf32>
    %39 = vector.broadcast %38 : vector<1x16xf32> to vector<16x16xf32>
    %40 = arith.addf %37, %39 : vector<16x16xf32>
    %cst_34 = arith.constant 0.000000e+00 : f32
    %41 = vector.broadcast %cst_34 : f32 to vector<16x16xf32>
    %42 = arith.cmpf oge, %40, %41 : vector<16x16xf32>
    %cst_35 = arith.constant 2.000000e-01 : f32
    %43 = vector.broadcast %cst_35 : f32 to vector<16x16xf32>
    %44 = arith.mulf %43, %40 : vector<16x16xf32>
    %45 = arith.select %42, %40, %44 : vector<16x16xi1>, vector<16x16xf32>
    %c1 = arith.constant 1 : index
    %c0_36 = arith.constant 0 : index
    %46 = vector.load %arg18[%c1, %c0_36] : memref<20x16xf32, #tpu.memory_space<vmem>>, vector<16x16xf32>
    tpu.vector_store %arg18[%c1, %c0_36], %45 {strides = array<i32>} : memref<20x16xf32, #tpu.memory_space<vmem>>, vector<16x16xf32>,
    %c0_37 = arith.constant 0 : index
    %c0_38 = arith.constant 0 : index
    %47 = vector.load %arg9[%c0_37, %c0_38] : memref<1x32xf32, #tpu.memory_space<vmem>>, vector<1x32xf32>
    %c0_39 = arith.constant 0 : index
    %c0_40 = arith.constant 0 : index
    %48 = tpu.strided_load %arg18[%c0_39, %c0_40] {strides = array<i32: 2, 1>} : memref<20x16xf32, #tpu.memory_space<vmem>>, vector<9x16xf32>
    %49 = arith.truncf %48 : vector<9x16xf32> to vector<9x16xbf16>
    %c0_41 = arith.constant 0 : index
    %c0_42 = arith.constant 0 : index
    %50 = vector.load %arg8[%c0_41, %c0_42] : memref<64x32xbf16, #tpu.memory_space<vmem>>, vector<16x32xbf16>
    %cst_43 = arith.constant dense<0.000000e+00> : vector<9x32xf32>
    %51 = tpu.matmul %49, %50, %cst_43 {dimension_numbers = #tpu.dot_dimension_numbers<[1], [0], [0], [1], [0, 0, 1, 1], [], []>} : vector<9x16xbf16>, vector<16x32xbf16>, vector<9x32xf32> -> vector<9x32xf32>
    %52 = vector.broadcast %47 : vector<1x32xf32> to vector<9x32xf32>
    %53 = arith.addf %52, %51 : vector<9x32xf32>
    %c1_44 = arith.constant 1 : index
    %c0_45 = arith.constant 0 : index
    %54 = tpu.strided_load %arg18[%c1_44, %c0_45] {strides = array<i32: 2, 1>} : memref<20x16xf32, #tpu.memory_space<vmem>>, vector<9x16xf32>
    %55 = arith.truncf %54 : vector<9x16xf32> to vector<9x16xbf16>
    %c16 = arith.constant 16 : index
    %c0_46 = arith.constant 0 : index
    %56 = vector.load %arg8[%c16, %c0_46] : memref<64x32xbf16, #tpu.memory_space<vmem>>, vector<16x32xbf16>
    %cst_47 = arith.constant dense<0.000000e+00> : vector<9x32xf32>
    %57 = tpu.matmul %55, %56, %cst_47 {dimension_numbers = #tpu.dot_dimension_numbers<[1], [0], [0], [1], [0, 0, 1, 1], [], []>} : vector<9x16xbf16>, vector<16x32xbf16>, vector<9x32xf32> -> vector<9x32xf32>
    %58 = arith.addf %53, %57 : vector<9x32xf32>
    %c2 = arith.constant 2 : index
    %c0_48 = arith.constant 0 : index
    %59 = tpu.strided_load %arg18[%c2, %c0_48] {strides = array<i32: 2, 1>} : memref<20x16xf32, #tpu.memory_space<vmem>>, vector<9x16xf32>
    %60 = arith.truncf %59 : vector<9x16xf32> to vector<9x16xbf16>
    %c32 = arith.constant 32 : index
    %c0_49 = arith.constant 0 : index
    %61 = vector.load %arg8[%c32, %c0_49] : memref<64x32xbf16, #tpu.memory_space<vmem>>, vector<16x32xbf16>
    %cst_50 = arith.constant dense<0.000000e+00> : vector<9x32xf32>
    %62 = tpu.matmul %60, %61, %cst_50 {dimension_numbers = #tpu.dot_dimension_numbers<[1], [0], [0], [1], [0, 0, 1, 1], [], []>} : vector<9x16xbf16>, vector<16x32xbf16>, vector<9x32xf32> -> vector<9x32xf32>
    %63 = arith.addf %58, %62 : vector<9x32xf32>
    %c3 = arith.constant 3 : index
    %c0_51 = arith.constant 0 : index
    %64 = tpu.strided_load %arg18[%c3, %c0_51] {strides = array<i32: 2, 1>} : memref<20x16xf32, #tpu.memory_space<vmem>>, vector<9x16xf32>
    %65 = arith.truncf %64 : vector<9x16xf32> to vector<9x16xbf16>
    %c48 = arith.constant 48 : index
    %c0_52 = arith.constant 0 : index
    %66 = vector.load %arg8[%c48, %c0_52] : memref<64x32xbf16, #tpu.memory_space<vmem>>, vector<16x32xbf16>
    %cst_53 = arith.constant dense<0.000000e+00> : vector<9x32xf32>
    %67 = tpu.matmul %65, %66, %cst_53 {dimension_numbers = #tpu.dot_dimension_numbers<[1], [0], [0], [1], [0, 0, 1, 1], [], []>} : vector<9x16xbf16>, vector<16x32xbf16>, vector<9x32xf32> -> vector<9x32xf32>
    %68 = arith.addf %63, %67 : vector<9x32xf32>
    %cst_54 = arith.constant 0.000000e+00 : f32
    %69 = vector.broadcast %cst_54 : f32 to vector<9x32xf32>
    %70 = arith.cmpf oge, %68, %69 : vector<9x32xf32>
    %cst_55 = arith.constant 2.000000e-01 : f32
    %71 = vector.broadcast %cst_55 : f32 to vector<9x32xf32>
    %72 = arith.mulf %71, %68 : vector<9x32xf32>
    %73 = arith.select %70, %68, %72 : vector<9x32xi1>, vector<9x32xf32>
    %74 = vector.extract_strided_slice %73 {offsets = [0, 0], sizes = [8, 32], strides = [1, 1]} : vector<9x32xf32> to vector<8x32xf32>
    %c1_56 = arith.constant 1 : index
    %c0_57 = arith.constant 0 : index
    %75 = vector.load %arg19[%c1_56, %c0_57] : memref<12x32xf32, #tpu.memory_space<vmem>>, vector<8x32xf32>
    tpu.vector_store %arg19[%c1_56, %c0_57], %74 {strides = array<i32>} : memref<12x32xf32, #tpu.memory_space<vmem>>, vector<8x32xf32>,
    %c0_58 = arith.constant 0 : index
    %c0_59 = arith.constant 0 : index
    %76 = vector.load %arg11[%c0_58, %c0_59] : memref<1x32xf32, #tpu.memory_space<vmem>>, vector<1x32xf32>
    %c0_60 = arith.constant 0 : index
    %c0_61 = arith.constant 0 : index
    %77 = tpu.strided_load %arg19[%c0_60, %c0_61] {strides = array<i32: 2, 1>} : memref<12x32xf32, #tpu.memory_space<vmem>>, vector<5x32xf32>
    %78 = arith.truncf %77 : vector<5x32xf32> to vector<5x32xbf16>
    %c0_62 = arith.constant 0 : index
    %c0_63 = arith.constant 0 : index
    %79 = vector.load %arg10[%c0_62, %c0_63] : memref<128x32xbf16, #tpu.memory_space<vmem>>, vector<32x32xbf16>
    %cst_64 = arith.constant dense<0.000000e+00> : vector<5x32xf32>
    %80 = tpu.matmul %78, %79, %cst_64 {dimension_numbers = #tpu.dot_dimension_numbers<[1], [0], [0], [1], [0, 0, 1, 1], [], []>} : vector<5x32xbf16>, vector<32x32xbf16>, vector<5x32xf32> -> vector<5x32xf32>
    %81 = vector.broadcast %76 : vector<1x32xf32> to vector<5x32xf32>
    %82 = arith.addf %81, %80 : vector<5x32xf32>
    %c1_65 = arith.constant 1 : index
    %c0_66 = arith.constant 0 : index
    %83 = tpu.strided_load %arg19[%c1_65, %c0_66] {strides = array<i32: 2, 1>} : memref<12x32xf32, #tpu.memory_space<vmem>>, vector<5x32xf32>
    %84 = arith.truncf %83 : vector<5x32xf32> to vector<5x32xbf16>
    %c32_67 = arith.constant 32 : index
    %c0_68 = arith.constant 0 : index
    %85 = vector.load %arg10[%c32_67, %c0_68] : memref<128x32xbf16, #tpu.memory_space<vmem>>, vector<32x32xbf16>
    %cst_69 = arith.constant dense<0.000000e+00> : vector<5x32xf32>
    %86 = tpu.matmul %84, %85, %cst_69 {dimension_numbers = #tpu.dot_dimension_numbers<[1], [0], [0], [1], [0, 0, 1, 1], [], []>} : vector<5x32xbf16>, vector<32x32xbf16>, vector<5x32xf32> -> vector<5x32xf32>
    %87 = arith.addf %82, %86 : vector<5x32xf32>
    %c2_70 = arith.constant 2 : index
    %c0_71 = arith.constant 0 : index
    %88 = tpu.strided_load %arg19[%c2_70, %c0_71] {strides = array<i32: 2, 1>} : memref<12x32xf32, #tpu.memory_space<vmem>>, vector<5x32xf32>
    %89 = arith.truncf %88 : vector<5x32xf32> to vector<5x32xbf16>
    %c64 = arith.constant 64 : index
    %c0_72 = arith.constant 0 : index
    %90 = vector.load %arg10[%c64, %c0_72] : memref<128x32xbf16, #tpu.memory_space<vmem>>, vector<32x32xbf16>
    %cst_73 = arith.constant dense<0.000000e+00> : vector<5x32xf32>
    %91 = tpu.matmul %89, %90, %cst_73 {dimension_numbers = #tpu.dot_dimension_numbers<[1], [0], [0], [1], [0, 0, 1, 1], [], []>} : vector<5x32xbf16>, vector<32x32xbf16>, vector<5x32xf32> -> vector<5x32xf32>
    %92 = arith.addf %87, %91 : vector<5x32xf32>
    %c3_74 = arith.constant 3 : index
    %c0_75 = arith.constant 0 : index
    %93 = tpu.strided_load %arg19[%c3_74, %c0_75] {strides = array<i32: 2, 1>} : memref<12x32xf32, #tpu.memory_space<vmem>>, vector<5x32xf32>
    %94 = arith.truncf %93 : vector<5x32xf32> to vector<5x32xbf16>
    %c96 = arith.constant 96 : index
    %c0_76 = arith.constant 0 : index
    %95 = vector.load %arg10[%c96, %c0_76] : memref<128x32xbf16, #tpu.memory_space<vmem>>, vector<32x32xbf16>
    %cst_77 = arith.constant dense<0.000000e+00> : vector<5x32xf32>
    %96 = tpu.matmul %94, %95, %cst_77 {dimension_numbers = #tpu.dot_dimension_numbers<[1], [0], [0], [1], [0, 0, 1, 1], [], []>} : vector<5x32xbf16>, vector<32x32xbf16>, vector<5x32xf32> -> vector<5x32xf32>
    %97 = arith.addf %92, %96 : vector<5x32xf32>
    %cst_78 = arith.constant 0.000000e+00 : f32
    %98 = vector.broadcast %cst_78 : f32 to vector<5x32xf32>
    %99 = arith.cmpf oge, %97, %98 : vector<5x32xf32>
    %cst_79 = arith.constant 2.000000e-01 : f32
    %100 = vector.broadcast %cst_79 : f32 to vector<5x32xf32>
    %101 = arith.mulf %100, %97 : vector<5x32xf32>
    %102 = arith.select %99, %97, %101 : vector<5x32xi1>, vector<5x32xf32>
    %103 = vector.extract_strided_slice %102 {offsets = [0, 0], sizes = [4, 32], strides = [1, 1]} : vector<5x32xf32> to vector<4x32xf32>
    %c1_80 = arith.constant 1 : index
    %c0_81 = arith.constant 0 : index
    %104 = vector.load %arg20[%c1_80, %c0_81] : memref<8x32xf32, #tpu.memory_space<vmem>>, vector<4x32xf32>
    tpu.vector_store %arg20[%c1_80, %c0_81], %103 {strides = array<i32>} : memref<8x32xf32, #tpu.memory_space<vmem>>, vector<4x32xf32>,
    %c0_82 = arith.constant 0 : index
    %c0_83 = arith.constant 0 : index
    %105 = vector.load %arg13[%c0_82, %c0_83] : memref<1x32xf32, #tpu.memory_space<vmem>>, vector<1x32xf32>
    %c0_84 = arith.constant 0 : index
    %c0_85 = arith.constant 0 : index
    %106 = tpu.strided_load %arg20[%c0_84, %c0_85] {strides = array<i32: 2, 1>} : memref<8x32xf32, #tpu.memory_space<vmem>>, vector<3x32xf32>
    %107 = arith.truncf %106 : vector<3x32xf32> to vector<3x32xbf16>
    %c0_86 = arith.constant 0 : index
    %c0_87 = arith.constant 0 : index
    %108 = vector.load %arg12[%c0_86, %c0_87] : memref<128x32xbf16, #tpu.memory_space<vmem>>, vector<32x32xbf16>
    %cst_88 = arith.constant dense<0.000000e+00> : vector<3x32xf32>
    %109 = tpu.matmul %107, %108, %cst_88 {dimension_numbers = #tpu.dot_dimension_numbers<[1], [0], [0], [1], [0, 0, 1, 1], [], []>} : vector<3x32xbf16>, vector<32x32xbf16>, vector<3x32xf32> -> vector<3x32xf32>
    %110 = vector.broadcast %105 : vector<1x32xf32> to vector<3x32xf32>
    %111 = arith.addf %110, %109 : vector<3x32xf32>
    %c1_89 = arith.constant 1 : index
    %c0_90 = arith.constant 0 : index
    %112 = tpu.strided_load %arg20[%c1_89, %c0_90] {strides = array<i32: 2, 1>} : memref<8x32xf32, #tpu.memory_space<vmem>>, vector<3x32xf32>
    %113 = arith.truncf %112 : vector<3x32xf32> to vector<3x32xbf16>
    %c32_91 = arith.constant 32 : index
    %c0_92 = arith.constant 0 : index
    %114 = vector.load %arg12[%c32_91, %c0_92] : memref<128x32xbf16, #tpu.memory_space<vmem>>, vector<32x32xbf16>
    %cst_93 = arith.constant dense<0.000000e+00> : vector<3x32xf32>
    %115 = tpu.matmul %113, %114, %cst_93 {dimension_numbers = #tpu.dot_dimension_numbers<[1], [0], [0], [1], [0, 0, 1, 1], [], []>} : vector<3x32xbf16>, vector<32x32xbf16>, vector<3x32xf32> -> vector<3x32xf32>
    %116 = arith.addf %111, %115 : vector<3x32xf32>
    %c2_94 = arith.constant 2 : index
    %c0_95 = arith.constant 0 : index
    %117 = tpu.strided_load %arg20[%c2_94, %c0_95] {strides = array<i32: 2, 1>} : memref<8x32xf32, #tpu.memory_space<vmem>>, vector<3x32xf32>
    %118 = arith.truncf %117 : vector<3x32xf32> to vector<3x32xbf16>
    %c64_96 = arith.constant 64 : index
    %c0_97 = arith.constant 0 : index
    %119 = vector.load %arg12[%c64_96, %c0_97] : memref<128x32xbf16, #tpu.memory_space<vmem>>, vector<32x32xbf16>
    %cst_98 = arith.constant dense<0.000000e+00> : vector<3x32xf32>
    %120 = tpu.matmul %118, %119, %cst_98 {dimension_numbers = #tpu.dot_dimension_numbers<[1], [0], [0], [1], [0, 0, 1, 1], [], []>} : vector<3x32xbf16>, vector<32x32xbf16>, vector<3x32xf32> -> vector<3x32xf32>
    %121 = arith.addf %116, %120 : vector<3x32xf32>
    %c3_99 = arith.constant 3 : index
    %c0_100 = arith.constant 0 : index
    %122 = tpu.strided_load %arg20[%c3_99, %c0_100] {strides = array<i32: 2, 1>} : memref<8x32xf32, #tpu.memory_space<vmem>>, vector<3x32xf32>
    %123 = arith.truncf %122 : vector<3x32xf32> to vector<3x32xbf16>
    %c96_101 = arith.constant 96 : index
    %c0_102 = arith.constant 0 : index
    %124 = vector.load %arg12[%c96_101, %c0_102] : memref<128x32xbf16, #tpu.memory_space<vmem>>, vector<32x32xbf16>
    %cst_103 = arith.constant dense<0.000000e+00> : vector<3x32xf32>
    %125 = tpu.matmul %123, %124, %cst_103 {dimension_numbers = #tpu.dot_dimension_numbers<[1], [0], [0], [1], [0, 0, 1, 1], [], []>} : vector<3x32xbf16>, vector<32x32xbf16>, vector<3x32xf32> -> vector<3x32xf32>
    %126 = arith.addf %121, %125 : vector<3x32xf32>
    %cst_104 = arith.constant 0.000000e+00 : f32
    %127 = vector.broadcast %cst_104 : f32 to vector<3x32xf32>
    %128 = arith.cmpf oge, %126, %127 : vector<3x32xf32>
    %cst_105 = arith.constant 2.000000e-01 : f32
    %129 = vector.broadcast %cst_105 : f32 to vector<3x32xf32>
    %130 = arith.mulf %129, %126 : vector<3x32xf32>
    %131 = arith.select %128, %126, %130 : vector<3x32xi1>, vector<3x32xf32>
    %c0_106 = arith.constant 0 : index
    %c0_107 = arith.constant 0 : index
    %132 = vector.load %arg14[%c0_106, %c0_107] : memref<3x32xf32, #tpu.memory_space<vmem>>, vector<3x32xf32>
    %133 = arith.mulf %131, %132 : vector<3x32xf32>
    %c0_108 = arith.constant 0 : index
    %c0_109 = arith.constant 0 : index
    %134 = vector.load %arg15[%c0_108, %c0_109] : memref<1x3xf32, #tpu.memory_space<vmem>>, vector<1x3xf32>
    %cst_110 = arith.constant dense<0.000000e+00> : vector<1x32xf32>
    %135 = tpu.matmul %134, %133, %cst_110 {dimension_numbers = #tpu.dot_dimension_numbers<[1], [0], [0], [1], [0, 0, 1, 1], [], []>} : vector<1x3xf32>, vector<3x32xf32>, vector<1x32xf32> -> vector<1x32xf32>
    %cst_111 = arith.constant dense<0.000000e+00> : vector<1xf32>
    %136 = vector.multi_reduction <add>, %135, %cst_111 [1] : vector<1x32xf32> to vector<1xf32>
    %137 = vector.shape_cast %136 : vector<1xf32> to vector<1x1xf32>
    %c0_112 = arith.constant 0 : index
    %c0_113 = arith.constant 0 : index
    %138 = vector.load %arg16[%c0_112, %c0_113] : memref<1x1xf32, #tpu.memory_space<vmem>>, vector<1x1xf32>
    %139 = arith.addf %137, %138 : vector<1x1xf32>
    %140 = vector.shape_cast %139 : vector<1x1xf32> to vector<1x1x1xf32>
    %c0_114 = arith.constant 0 : index
    %c0_115 = arith.constant 0 : index
    %c0_116 = arith.constant 0 : index
    %141 = vector.load %arg17[%c0_114, %c0_115, %c0_116] : memref<1x1x1xf32, #tpu.memory_space<vmem>>, vector<1x1x1xf32>
    tpu.vector_store %arg17[%c0_114, %c0_115, %c0_116], %140 {strides = array<i32>} : memref<1x1x1xf32, #tpu.memory_space<vmem>>, vector<1x1x1xf32>,
    return
  }
  func.func @transform_0(%arg0: i32) -> (i32, i32) {
    %c0_i32 = arith.constant 0 : i32
    %c0_i32_0 = arith.constant 0 : i32
    return %arg0, %c0_i32 : i32, i32
  }
  func.func @transform_1(%arg0: i32) -> (i32, i32) {
    %c0_i32 = arith.constant 0 : i32
    %c0_i32_0 = arith.constant 0 : i32
    %c0_i32_1 = arith.constant 0 : i32
    return %c0_i32, %c0_i32_0 : i32, i32
  }
  func.func @transform_2(%arg0: i32) -> (i32, i32) {
    %c0_i32 = arith.constant 0 : i32
    %c0_i32_0 = arith.constant 0 : i32
    %c0_i32_1 = arith.constant 0 : i32
    return %c0_i32, %c0_i32_0 : i32, i32
  }
  func.func @transform_3(%arg0: i32) -> (i32, i32) {
    %c0_i32 = arith.constant 0 : i32
    %c0_i32_0 = arith.constant 0 : i32
    %c0_i32_1 = arith.constant 0 : i32
    return %c0_i32, %c0_i32_0 : i32, i32
  }
  func.func @transform_4(%arg0: i32) -> (i32, i32) {
    %c0_i32 = arith.constant 0 : i32
    %c0_i32_0 = arith.constant 0 : i32
    %c0_i32_1 = arith.constant 0 : i32
    return %c0_i32, %c0_i32_0 : i32, i32
  }
  func.func @transform_5(%arg0: i32) -> (i32, i32) {
    %c0_i32 = arith.constant 0 : i32
    %c0_i32_0 = arith.constant 0 : i32
    %c0_i32_1 = arith.constant 0 : i32
    return %c0_i32, %c0_i32_0 : i32, i32
  }
  func.func @transform_6(%arg0: i32) -> (i32, i32) {
    %c0_i32 = arith.constant 0 : i32
    %c0_i32_0 = arith.constant 0 : i32
    %c0_i32_1 = arith.constant 0 : i32
    return %c0_i32, %c0_i32_0 : i32, i32
  }
  func.func @transform_7(%arg0: i32) -> (i32, i32) {
    %c0_i32 = arith.constant 0 : i32
    %c0_i32_0 = arith.constant 0 : i32
    %c0_i32_1 = arith.constant 0 : i32
    return %c0_i32, %c0_i32_0 : i32, i32
  }
  func.func @transform_8(%arg0: i32) -> (i32, i32) {
    %c0_i32 = arith.constant 0 : i32
    %c0_i32_0 = arith.constant 0 : i32
    %c0_i32_1 = arith.constant 0 : i32
    return %c0_i32, %c0_i32_0 : i32, i32
  }
  func.func @transform_9(%arg0: i32) -> (i32, i32) {
    %c0_i32 = arith.constant 0 : i32
    %c0_i32_0 = arith.constant 0 : i32
    %c0_i32_1 = arith.constant 0 : i32
    return %c0_i32, %c0_i32_0 : i32, i32
  }
  func.func @transform_10(%arg0: i32) -> (i32, i32) {
    %c0_i32 = arith.constant 0 : i32
    %c0_i32_0 = arith.constant 0 : i32
    %c0_i32_1 = arith.constant 0 : i32
    return %c0_i32, %c0_i32_0 : i32, i32
  }
  func.func @transform_11(%arg0: i32) -> (i32, i32) {
    %c0_i32 = arith.constant 0 : i32
    %c0_i32_0 = arith.constant 0 : i32
    %c0_i32_1 = arith.constant 0 : i32
    return %c0_i32, %c0_i32_0 : i32, i32
  }
  func.func @transform_12(%arg0: i32) -> (i32, i32) {
    %c0_i32 = arith.constant 0 : i32
    %c0_i32_0 = arith.constant 0 : i32
    %c0_i32_1 = arith.constant 0 : i32
    return %c0_i32, %c0_i32_0 : i32, i32
  }
  func.func @transform_13(%arg0: i32) -> (i32, i32) {
    %c0_i32 = arith.constant 0 : i32
    %c0_i32_0 = arith.constant 0 : i32
    %c0_i32_1 = arith.constant 0 : i32
    return %c0_i32, %c0_i32_0 : i32, i32
  }
  func.func @transform_14(%arg0: i32) -> (i32, i32) {
    %c0_i32 = arith.constant 0 : i32
    %c0_i32_0 = arith.constant 0 : i32
    %c0_i32_1 = arith.constant 0 : i32
    return %c0_i32, %c0_i32_0 : i32, i32
  }
  func.func @transform_15(%arg0: i32) -> (i32, i32) {
    %c0_i32 = arith.constant 0 : i32
    %c0_i32_0 = arith.constant 0 : i32
    %c0_i32_1 = arith.constant 0 : i32
    return %c0_i32, %c0_i32_0 : i32, i32
  }
  func.func @transform_16(%arg0: i32) -> (i32, i32, i32) {
    %c0_i32 = arith.constant 0 : i32
    %c0_i32_0 = arith.constant 0 : i32
    %c0_i32_1 = arith.constant 0 : i32
    return %arg0, %c0_i32, %c0_i32_0 : i32, i32, i32
  }
}

</mosaic_0001>

<bundles_post_ra>
// kernel: disc_forward.1
= control target key start
LH: loop header
LB: loop body
LE: loop exit
PB: predicated region body
PF: predicated region fallthrough
CT: control target
= control target key end

     0   :  { %s2019_s23 = smov 0   ;;  %s2216_s0 = inlined_call_operand.vmem [shape: f32[32,11], index: 0, kind: input, shape index: {}]   ;;  %s2217_s1 = inlined_call_operand.vmem [shape: bf16[11,16], index: 1, kind: input, shape index: {}]   ;;  %s2218_s2 = inlined_call_operand.vmem [shape: f32[1,16], index: 2, kind: input, shape index: {}]   ;;  %s2219_s3 = inlined_call_operand.vmem [shape: bf16[16,16], index: 3, kind: input, shape index: {}]   ;;  %s2220_s4 = inlined_call_operand.vmem [shape: f32[1,16], index: 4, kind: input, shape index: {}]   ;;  %s2221_s5 = inlined_call_operand.vmem [shape: bf16[16,16], index: 5, kind: input, shape index: {}]   ;;  %s2222_s6 = inlined_call_operand.vmem [shape: f32[1,16], index: 6, kind: input, shape index: {}]   ;;  %s2223_s7 = inlined_call_operand.vmem [shape: bf16[64,32], index: 7, kind: input, shape index: {}]   ;;  %s2224_s8 = inlined_call_operand.vmem [shape: f32[1,32], index: 8, kind: input, shape index: {}]   ;;  %s2225_s9 = inlined_call_operand.vmem [shape: bf16[128,32], index: 9, kind: input, shape index: {}]   ;;  %s2226_s10 = inlined_call_operand.vmem [shape: f32[1,32], index: 10, kind: input, shape index: {}]   ;;  %s2227_s11 = inlined_call_operand.vmem [shape: bf16[128,32], index: 11, kind: input, shape index: {}]   ;;  %s2228_s12 = inlined_call_operand.vmem [shape: f32[1,32], index: 12, kind: input, shape index: {}]   ;;  %s2229_s13 = inlined_call_operand.vmem [shape: f32[3,32], index: 13, kind: input, shape index: {}]   ;;  %s2230_s14 = inlined_call_operand.vmem [shape: f32[1,3], index: 14, kind: input, shape index: {}]   ;;  %s2231_s15 = inlined_call_operand.<no memory space> [shape: f32[1,1], index: 15, kind: input, shape index: {}]   ;;  %s2232_s16 = inlined_call_operand.vmem [shape: f32[2,1,1], index: 16, kind: output, shape index: {}]  }
   0x1   :  { %2233 = sst [smem:[#allocation6_spill]] %s2216_s0  ;;  %v21_v0 = vstv %s2231_s15 }
   0x2   :  { %22 = vst [vmem:[#allocation5] sm:$0x1] %v21_v0 }
   0x3 LB: > { %s2025_s24 = sadd.s32 4294967295, %s1926_s23   ;;  %p1645_p0 = scmp.ge.s32.totalorder %s1926_s23, 1  ;;  %s1926_s23 = sphi %s2019_s23, %s28_s23  }
   0x4   : > { %p465_p1 = scmp.lt.s32.totalorder %s1926_s23, 3 }
   0x6   : > { %p466_p2 = pnand %p1645_p0, %p465_p1 }
   0x7   : > { %vm554_vm0 = vcmask (!%p466_p2), 1044480   ;;  %v1928_v1 = vmov (!%p466_p2), 0.0   ;;  %v1897_v2 = vld [vmem:[%s2217_s1] sm:$0x3f] (!%p466_p2)   ;;  %vm555_vm1 = vcmask (!%p466_p2), 1045504   ;;  %s1646_s26 = sshll.u32 (!%p466_p2), %s2025_s24, 1 }
   0x8   : > { %469 = sbr.rel (%p466_p2) target bundleno = 1832 (0x728), region = 84  ;;  %1736 = vmatprep.subr.bf16.mxu0 (!%p466_p2), %v1928_v1  ;;  %1754 = vmatprep.subr.bf16.mxu1 (!%p466_p2), %v1928_v1  ;;  %v1929_v3 = vmov (!%p466_p2), 65535   ;;  %vm1930_vm2 = vmmov (!%p466_p2), 0   ;;  %p514_p3 = scmp.lt.s32.totalorder (!%p466_p2), %s1646_s26, 3  ;;  %vm550_vm3 = vcmask (!%p466_p2), 89088   ;;  %v1898_v10 = vld [vmem:[%s2219_s3] sm:$0xff] (!%p466_p2)  }
   0x9   : > { %v556_v4 = vsel (!%p466_p2), %vm554_vm0, 4294967295, %v1929_v3  ;;  %1738 = vmatprep.mubr.msk.bf16.mxu0 (!%p466_p2), %vm1930_vm2, %v1928_v1  ;;  %1756 = vmatprep.mubr.msk.bf16.mxu1 (!%p466_p2), %vm1930_vm2, %v1928_v1  ;;  %s2234_s30 = sld [smem:[#allocation6_spill]] (!%p466_p2)  ;;  %v1648_v11 = vld [vmem:[%s2218_s2] ss:$0 sm:$0xff] (!%p466_p2)  ;;  %vm624_vm6 = vcmask (!%p466_p2), 130048   ;;  %vm523_vm9 = vcmask (!%p466_p2), 122880  }
   0xa   : > { %v557_v5 = vsel (!%p466_p2), %vm555_vm1, %v556_v4, 0  ;;  %v1899_v23 = vld [vmem:[%s2221_s5] sm:$0xff] (!%p466_p2)   ;;  %vm525_vm10 = vcmask (!%p466_p2), 124928   ;;  %524 = vst.msk [vmem:[#allocation2] sm:$0x1] (!%p466_p2), %vm523_vm9, %v1928_v1  ;;  %v1901_v50 = vld [vmem:[%s2223_s7 + $0x8] sm:$0xff] (!%p466_p2)  }
   0xb   : > { %v559_v6 = vand.u32 (!%p466_p2), %v1897_v2, %v557_v5  ;;  %v1651_v24 = vld [vmem:[%s2220_s4] ss:$0 sm:$0xff] (!%p466_p2)  ;;  %526 = vst.msk [vmem:[#allocation2 + $0x11] sm:$0x7] (!%p466_p2), %vm525_vm10, %v1928_v1  ;;  %v1902_v54 = vld [vmem:[%s2223_s7 + $0x10] sm:$0xff] (!%p466_p2)   ;;  %v1903_v58 = vld [vmem:[%s2223_s7 + $0x18] sm:$0xff] (!%p466_p2)  }
   0xc   : > { %v1900_v36 = vld [vmem:[%s2223_s7] sm:$0xff] (!%p466_p2)   ;;  %vm527_vm13 = vcmask (!%p466_p2), 253952   ;;  %vm529_vm14 = vcmask (!%p466_p2), 256000   ;;  %v1905_v0 = vld [vmem:[%s2225_s9 + $0x8] sm:$0xff] (!%p466_p2)   ;;  %vm980_vm0 = vcmask (!%p466_p2), 261120   ;;  %p519_p4 = scmp.lt.s32.totalorder (!%p466_p2), %s2025_s24, 1 }
   0xd   : > { %1737 = vmatpush3.bf16.msra.mxu0 (!%p466_p2), %v559_v6  ;;  %1755 = vmatpush3.bf16.msra.mxu1 (!%p466_p2), %v1900_v36  ;;  %v1654_v37 = vld [vmem:[%s2222_s6] ss:$0 sm:$0xff] (!%p466_p2)  ;;  %528 = vst.msk [vmem:[#allocation3] sm:$0x1] (!%p466_p2), %vm527_vm13, %v1928_v1  ;;  %531 = vst.msk [vmem:[#allocation4] sm:$0x1] (!%p466_p2), %vm527_vm13, %v1928_v1 }
   0xe   : > { %1742 = vmatprep.subr.bf16.mxu0 (!%p466_p2), %v1928_v1  ;;  %1760 = vmatprep.subr.bf16.mxu1 (!%p466_p2), %v1928_v1  ;;  %v1904_v63 = vld [vmem:[%s2225_s9] sm:$0xff] (!%p466_p2)   ;;  %530 = vst.msk [vmem:[#allocation3 + $0x9] sm:$0x7] (!%p466_p2), %vm529_vm14, %v1928_v1  ;;  %532 = vst.msk [vmem:[#allocation4 + $0x5] sm:$0x7] (!%p466_p2), %vm529_vm14, %v1928_v1 }
   0xf   : > { %s2236_s26 = smov (!%p514_p3, %s1646_s26), 3  ;;  %v1659_v2 = vld [vmem:[%s2224_s8] ss:$0 sm:$0xff]  ;;  %s2238_s24 = smov (!%p519_p4, %s2025_s24), 1 }
  0x10   : > { %s1647_s27 = sshll.u32 %s2236_s26, 3  ;;  %s521_s15 = scalar_lea.vmem %s2232_s16, %s2238_s24 }
  0x11   : > { %s517_s0 = scalar_lea.vmem %s2234_s30, %s1647_s27 }
  0x12   : > { %v533_v7 = vld [vmem:[%s517_s0] sm:$0xff]  ;;  %v534_v8 = vld [vmem:[%s517_s0 + $0x8] sm:$0xff]  ;;  %v809_v53 = vld [vmem:[#allocation2 + $0x11] ss:$2 sm:$0x1] }
  0x13   : > { %v535_v9 = vpack.c.bf16 %v534_v8, %v533_v7  ;;  %v866_v57 = vld [vmem:[#allocation2 + $0x12] ss:$2 sm:$0x1]  ;;  %v923_v61 = vld [vmem:[#allocation2 + $0x13] ss:$2 sm:$0x1] }
  0x15   : > { %1739 = vmatmul.mubr.msk.bf16.vlgmr.msra.gmra.mrb[0].mxu0 %vm550_vm3, %v535_v9  ;;  %vm1243_vm3 = vcmask 257024  }
  0x16   : > { %1744 = vmatprep.mubr.msk.bf16.mxu0 %vm1930_vm2, %v1928_v1  ;;  %1743 = vmatpush3.bf16.msra.mxu0 %v1898_v10 }
  0x17   : > { %1748 = vmatprep.subr.bf16.mxu0 %v1928_v1 }
  0xe8   : > { %v595_v12 = vpop.f32.mrb[0].mxu0 }
  0xe9   : > { %v596_v13 = vadd.f32 %v1648_v11, %v595_v12  ;;  %v1740_v14 = vpop.f32.mrb[1].mxu0 }
  0xea   : > { %v598_v15 = vpop.f32.mrb[2].mxu0 }
  0xeb   : > { %v604_v16 = vmul.f32 0.2, %v596_v13  ;;  %v599_v17 = vadd.f32 %v1648_v11, %v598_v15  ;;  %v1741_v18 = vpop.f32.mrb[3].mxu0  ;;  %vm602_vm4 = vcmp.ge.f32.partialorder %v596_v13, 0.0  ;;  %v1906_v11 = vld [vmem:[%s2225_s9 + $0x10] sm:$0xff]   ;;  %v1908_v15 = vld [vmem:[%s2225_s9 + $0x20] sm:$0xff]  }
  0xed   : > { %vm603_vm5 = vcmp.ge.f32.partialorder %v599_v17, 0.0  ;;  %v605_v19 = vmul.f32 0.2, %v599_v17  ;;  %v606_v20 = vsel %vm602_vm4, %v596_v13, %v604_v16  ;;  %v1907_v13 = vld [vmem:[%s2225_s9 + $0x18] sm:$0xff]  }
  0xef   : > { %v607_v21 = vsel %vm603_vm5, %v599_v17, %v605_v19  ;;  %v1909_v17 = vld [vmem:[%s2225_s9 + $0x28] sm:$0xff]   ;;  %v1910_v19 = vld [vmem:[%s2225_s9 + $0x30] sm:$0xff]   ;;  %vm1509_vm5 = vcmask 23552  }
  0xf0   : > { %v608_v22 = vpack.c.bf16 %v607_v21, %v606_v20  ;;  %v1911_v21 = vld [vmem:[%s2225_s9 + $0x38] sm:$0xff]  }
  0xf2   : > { %1745 = vmatmul.mubr.msk.bf16.vlgmr.msra.gmra.mrb[4].mxu0 %vm624_vm6, %v608_v22 }
  0xf3   : > { %1750 = vmatprep.mubr.msk.bf16.mxu0 %vm1930_vm2, %v1928_v1  ;;  %1749 = vmatpush3.bf16.msra.mxu0 %v1899_v23 }
  0xf4   : > { %1778 = vmatprep.subr.bf16.mxu0 %v1928_v1 }
 0x1c5   : > { %v662_v25 = vpop.f32.mrb[4].mxu0 }
 0x1c6   : > { %v663_v26 = vadd.f32 %v1651_v24, %v662_v25  ;;  %v1746_v27 = vpop.f32.mrb[5].mxu0  ;;  %v1913_v25 = vld [vmem:[%s2227_s11 + $0x8] sm:$0xff]  }
 0x1c7   : > { %v665_v28 = vpop.f32.mrb[6].mxu0 }
 0x1c8   : > { %v671_v29 = vmul.f32 0.2, %v663_v26  ;;  %v666_v30 = vadd.f32 %v1651_v24, %v665_v28  ;;  %v1747_v31 = vpop.f32.mrb[7].mxu0  ;;  %vm669_vm7 = vcmp.ge.f32.partialorder %v663_v26, 0.0  ;;  %v1912_v24 = vld [vmem:[%s2227_s11] sm:$0xff]  }
 0x1ca   : > { %vm670_vm8 = vcmp.ge.f32.partialorder %v666_v30, 0.0  ;;  %v672_v32 = vmul.f32 0.2, %v666_v30  ;;  %v673_v33 = vsel %vm669_vm7, %v663_v26, %v671_v29  ;;  %v1669_v26 = vld [vmem:[%s2226_s10] ss:$0 sm:$0xff] }
 0x1cc   : > { %v674_v34 = vsel %vm670_vm8, %v666_v30, %v672_v32 }
 0x1cd   : > { %v675_v35 = vpack.c.bf16 %v674_v34, %v673_v33 }
 0x1cf   : > { %1751 = vmatmul.mubr.msk.bf16.vlgmr.msra.gmra.mrb[8].mxu0 %vm624_vm6, %v675_v35  ;;  %v1914_v35 = vld [vmem:[%s2227_s11 + $0x10] sm:$0xff]  }
 0x1d0   : > { %1782 = vmatprep.mubr.msk.bf16.mxu0 %vm1930_vm2, %v1928_v1  ;;  %1779 = vmatpush3.bf16.msra.mxu0 %v1904_v63 }
 0x1d1   : > { %1780 = vmatprep.subr.bf16.mxu0 %v1928_v1 }
 0x1d4   : > { %1781 = vmatpush3.bf16.msra.mxu0 %v1905_v0 }
 0x1d5   : > { %1786 = vmatprep.subr.bf16.mxu0 %v1928_v1 }
 0x2a2   : > { %v728_v38 = vpop.f32.mrb[8].mxu0 }
 0x2a3   : > { %v729_v39 = vadd.f32 %v1654_v37, %v728_v38  ;;  %v1752_v40 = vpop.f32.mrb[9].mxu0 }
 0x2a4   : > { %v731_v41 = vpop.f32.mrb[10].mxu0 }
 0x2a5   : > { %vm735_vm11 = vcmp.ge.f32.partialorder %v729_v39, 0.0  ;;  %v737_v42 = vmul.f32 0.2, %v729_v39  ;;  %v732_v43 = vadd.f32 %v1654_v37, %v731_v41  ;;  %v1753_v44 = vpop.f32.mrb[11].mxu0  ;;  %v1915_v37 = vld [vmem:[%s2227_s11 + $0x18] sm:$0xff]   ;;  %v1917_v41 = vld [vmem:[%s2227_s11 + $0x28] sm:$0xff]  }
 0x2a7   : > { %v739_v45 = vsel %vm735_vm11, %v729_v39, %v737_v42  ;;  %vm736_vm12 = vcmp.ge.f32.partialorder %v732_v43, 0.0  ;;  %v738_v46 = vmul.f32 0.2, %v732_v43  ;;  %v1916_v39 = vld [vmem:[%s2227_s11 + $0x20] sm:$0xff]  }
 0x2a8   : > { %741 = vst.msk [vmem:[#allocation2 + $0x1] sm:$0xff] %vm624_vm6, %v739_v45  ;;  %v1919_v45 = vld [vmem:[%s2227_s11 + $0x38] sm:$0xff]  }
 0x2a9   : > { %v740_v47 = vsel %vm736_vm12, %v732_v43, %v738_v46  ;;  %v1918_v43 = vld [vmem:[%s2227_s11 + $0x30] sm:$0xff]  }
 0x2aa   : > { %742 = vst.msk [vmem:[#allocation2 + $0x9] sm:$0xff] %vm624_vm6, %v740_v47 }
 0x2b1   : > { %v744_v48 = vld [vmem:[#allocation2] ss:$2 sm:$0xff]  ;;  %v746_v49 = vld [vmem:[#allocation2 + $0x10] ss:$2 sm:$0x1] }
 0x2b2   : > { %v747_v51 = vpack.c.bf16 %v746_v49, %v744_v48  ;;  %v807_v52 = vld [vmem:[#allocation2 + $0x1] ss:$2 sm:$0xff]  ;;  %v864_v56 = vld [vmem:[#allocation2 + $0x2] ss:$2 sm:$0xff]  ;;  %v1682_v48 = vld [vmem:[%s2228_s12] ss:$0 sm:$0xff] }
 0x2b3   : > { %v810_v55 = vpack.c.bf16 %v809_v53, %v807_v52  ;;  %v867_v59 = vpack.c.bf16 %v866_v57, %v864_v56  ;;  %v921_v60 = vld [vmem:[#allocation2 + $0x3] ss:$2 sm:$0xff]  ;;  %v1508_v57 = vld [vmem:[%s2230_s14] sm:$0x1] }
 0x2b4   : > { %1757 = vmatmul.mubr.msk.bf16.vlgmr.msra.gmra.mrb[0].mxu1 %vm624_vm6, %v747_v51  ;;  %v924_v62 = vpack.c.bf16 %v923_v61, %v921_v60  ;;  %v1590_v61 = vld [vmem:[#allocation5] sm:$0x1] }
 0x2b5   : > { %1761 = vmatpush3.bf16.msra.mxu1 %v1901_v50  ;;  %1762 = vmatprep.mubr.msk.bf16.mxu1 %vm1930_vm2, %v1928_v1 }
 0x2b6   : > { %1766 = vmatprep.subr.bf16.mxu1 %v1928_v1 }
 0x2c0   : > { %1763 = vmatmul.mubr.msk.bf16.vlgmr.msra.gmra.mrb[0].mxu1 %vm624_vm6, %v810_v55 }
 0x2c1   : > { %1767 = vmatpush3.bf16.msra.mxu1 %v1902_v54  ;;  %1768 = vmatprep.mubr.msk.bf16.mxu1 %vm1930_vm2, %v1928_v1 }
 0x2c2   : > { %1772 = vmatprep.subr.bf16.mxu1 %v1928_v1 }
 0x2cc   : > { %1769 = vmatmul.mubr.msk.bf16.vlgmr.msra.gmra.mrb[0].mxu1 %vm624_vm6, %v867_v59 }
 0x2cd   : > { %1773 = vmatpush3.bf16.msra.mxu1 %v1903_v58  ;;  %1774 = vmatprep.mubr.msk.bf16.mxu1 %vm1930_vm2, %v1928_v1 }
 0x2ce   : > { %1810 = vmatprep.subr.bf16.mxu1 %v1928_v1 }
 0x2d8   : > { %1775 = vmatmul.mubr.msk.bf16.vlgmr.msra.gmra.mrb[0].mxu1 %vm624_vm6, %v924_v62  ;;  %vm1592_vm6 = vcmask 0  }
 0x2d9   : > { %1814 = vmatprep.mubr.msk.bf16.mxu1 %vm1930_vm2, %v1928_v1  ;;  %1811 = vmatpush3.bf16.msra.mxu1 %v1912_v24 }
 0x2da   : > { %1812 = vmatprep.subr.bf16.mxu1 %v1928_v1 }
 0x2dd   : > { %1813 = vmatpush3.bf16.msra.mxu1 %v1913_v25 }
 0x2de   : > { %1818 = vmatprep.subr.bf16.mxu1 %v1928_v1 }
 0x3ab   : > { %v970_v3 = vpop.f32.mrb[0].mxu1 }
 0x3ac   : > { %v1847_v4 = vadd.f32 %v1659_v2, %v970_v3  ;;  %v1776_v5 = vpop.f32.mrb[1].mxu1 }
 0x3ad   : > { %v973_v6 = vpop.f32.mrb[2].mxu1 }
 0x3ae   : > { %vm977_vm15 = vcmp.ge.f32.partialorder %v1847_v4, 0.0  ;;  %v978_v7 = vmul.f32 0.2, %v1847_v4  ;;  %v1777_v8 = vpop.f32.mrb[3].mxu1 }
 0x3b0   : > { %v979_v9 = vsel %vm977_vm15, %v1847_v4, %v978_v7 }
 0x3b1   : > { %981 = vst.msk [vmem:[#allocation3 + $0x1] sm:$0xff] %vm980_vm0, %v979_v9 }
 0x3b8   : > { %v983_v10 = vld [vmem:[#allocation3] ss:$2 sm:$0x1f]  ;;  %v1052_v14 = vld [vmem:[#allocation3 + $0x1] ss:$2 sm:$0x1f] }
 0x3b9   : > { %v984_v12 = vpack.c.bf16 %v983_v10, %v983_v10  ;;  %v1053_v16 = vpack.c.bf16 %v1052_v14, %v1052_v14  ;;  %v1115_v18 = vld [vmem:[#allocation3 + $0x2] ss:$2 sm:$0x1f]  ;;  %v1178_v22 = vld [vmem:[#allocation3 + $0x3] ss:$2 sm:$0x1f] }
 0x3ba   : > { %v1116_v20 = vpack.c.bf16 %v1115_v18, %v1115_v18  ;;  %v1179_v23 = vpack.c.bf16 %v1178_v22, %v1178_v22 }
 0x3bb   : > { %1783 = vmatmul.mubr.msk.bf16.vlgmr.msra.gmra.mrb[12].mxu0 %vm980_vm0, %v984_v12 }
 0x3bc   : > { %1787 = vmatpush3.bf16.msra.mxu0 %v1906_v11  ;;  %1790 = vmatprep.mubr.msk.bf16.mxu0 %vm1930_vm2, %v1928_v1 }
 0x3bd   : > { %1788 = vmatprep.subr.bf16.mxu0 %v1928_v1 }
 0x3c0   : > { %1789 = vmatpush3.bf16.msra.mxu0 %v1907_v13 }
 0x3c1   : > { %1794 = vmatprep.subr.bf16.mxu0 %v1928_v1 }
 0x3c7   : > { %1791 = vmatmul.mubr.msk.bf16.vlgmr.msra.gmra.mrb[12].mxu0 %vm980_vm0, %v1053_v16 }
 0x3c8   : > { %1795 = vmatpush3.bf16.msra.mxu0 %v1908_v15  ;;  %1798 = vmatprep.mubr.msk.bf16.mxu0 %vm1930_vm2, %v1928_v1 }
 0x3c9   : > { %1796 = vmatprep.subr.bf16.mxu0 %v1928_v1 }
 0x3cc   : > { %1797 = vmatpush3.bf16.msra.mxu0 %v1909_v17 }
 0x3cd   : > { %1802 = vmatprep.subr.bf16.mxu0 %v1928_v1 }
 0x3d3   : > { %1799 = vmatmul.mubr.msk.bf16.vlgmr.msra.gmra.mrb[12].mxu0 %vm980_vm0, %v1116_v20 }
 0x3d4   : > { %1803 = vmatpush3.bf16.msra.mxu0 %v1910_v19  ;;  %1806 = vmatprep.mubr.msk.bf16.mxu0 %vm1930_vm2, %v1928_v1 }
 0x3d5   : > { %1804 = vmatprep.subr.bf16.mxu0 %v1928_v1 }
 0x3d8   : > { %1805 = vmatpush3.bf16.msra.mxu0 %v1911_v21 }
 0x3d9   : > { %1842 = vmatprep.subr.mxu0 %v1928_v1 }
 0x3df   : > { %1807 = vmatmul.mubr.msk.bf16.vlgmr.msra.gmra.mrb[12].mxu0 %vm980_vm0, %v1179_v23 }
 0x3e0   : > { %1844 = vmatprep.mubr.msk.f32.mxu0 %vm1930_vm2, %v1928_v1 }
 0x4b2   : > { %v1233_v27 = vpop.f32.mrb[12].mxu0 }
 0x4b3   : > { %v1848_v28 = vadd.f32 %v1669_v26, %v1233_v27  ;;  %v1808_v29 = vpop.f32.mrb[13].mxu0 }
 0x4b4   : > { %v1236_v30 = vpop.f32.mrb[14].mxu0 }
 0x4b5   : > { %vm1240_vm1 = vcmp.ge.f32.partialorder %v1848_v28, 0.0  ;;  %v1241_v31 = vmul.f32 0.2, %v1848_v28  ;;  %v1809_v32 = vpop.f32.mrb[15].mxu0 }
 0x4b7   : > { %v1242_v33 = vsel %vm1240_vm1, %v1848_v28, %v1241_v31 }
 0x4b8   : > { %1244 = vst.msk [vmem:[#allocation4 + $0x1] sm:$0xf] %vm1243_vm3, %v1242_v33 }
 0x4bf   : > { %v1246_v34 = vld [vmem:[#allocation4] ss:$2 sm:$0x7]  ;;  %v1315_v38 = vld [vmem:[#allocation4 + $0x1] ss:$2 sm:$0x7] }
 0x4c0   : > { %v1247_v36 = vpack.c.bf16 %v1246_v34, %v1246_v34  ;;  %v1316_v40 = vpack.c.bf16 %v1315_v38, %v1315_v38  ;;  %v1378_v42 = vld [vmem:[#allocation4 + $0x2] ss:$2 sm:$0x7]  ;;  %v1441_v46 = vld [vmem:[#allocation4 + $0x3] ss:$2 sm:$0x7] }
 0x4c1   : > { %v1379_v44 = vpack.c.bf16 %v1378_v42, %v1378_v42  ;;  %v1442_v47 = vpack.c.bf16 %v1441_v46, %v1441_v46 }
 0x4c2   : > { %1815 = vmatmul.mubr.msk.bf16.vlgmr.msra.gmra.mrb[4].mxu1 %vm980_vm0, %v1247_v36 }
 0x4c3   : > { %1819 = vmatpush3.bf16.msra.mxu1 %v1914_v35  ;;  %1822 = vmatprep.mubr.msk.bf16.mxu1 %vm1930_vm2, %v1928_v1 }
 0x4c4   : > { %1820 = vmatprep.subr.bf16.mxu1 %v1928_v1 }
 0x4c7   : > { %1821 = vmatpush3.bf16.msra.mxu1 %v1915_v37 }
 0x4c8   : > { %1826 = vmatprep.subr.bf16.mxu1 %v1928_v1 }
 0x4ce   : > { %1823 = vmatmul.mubr.msk.bf16.vlgmr.msra.gmra.mrb[4].mxu1 %vm980_vm0, %v1316_v40 }
 0x4cf   : > { %1827 = vmatpush3.bf16.msra.mxu1 %v1916_v39  ;;  %1830 = vmatprep.mubr.msk.bf16.mxu1 %vm1930_vm2, %v1928_v1 }
 0x4d0   : > { %1828 = vmatprep.subr.bf16.mxu1 %v1928_v1 }
 0x4d3   : > { %1829 = vmatpush3.bf16.msra.mxu1 %v1917_v41 }
 0x4d4   : > { %1834 = vmatprep.subr.bf16.mxu1 %v1928_v1 }
 0x4da   : > { %1831 = vmatmul.mubr.msk.bf16.vlgmr.msra.gmra.mrb[4].mxu1 %vm980_vm0, %v1379_v44 }
 0x4db   : > { %1835 = vmatpush3.bf16.msra.mxu1 %v1918_v43  ;;  %1838 = vmatprep.mubr.msk.bf16.mxu1 %vm1930_vm2, %v1928_v1  ;;  %vm1513_vm2 = vcmask 1042432  }
 0x4dc   : > { %1836 = vmatprep.subr.bf16.mxu1 %v1928_v1  ;;  %v1506_v1 = vld [vmem:[%s2229_s13] sm:$0x7] }
 0x4df   : > { %1837 = vmatpush3.bf16.msra.mxu1 %v1919_v45 }
 0x4e6   : > { %1839 = vmatmul.mubr.msk.bf16.vlgmr.msra.gmra.mrb[4].mxu1 %vm980_vm0, %v1442_v47 }
 0x5b9   : > { %v1496_v49 = vpop.f32.mrb[4].mxu1 }
 0x5ba   : > { %v1849_v50 = vadd.f32 %v1682_v48, %v1496_v49  ;;  %v1840_v51 = vpop.f32.mrb[5].mxu1 }
 0x5bb   : > { %v1499_v52 = vpop.f32.mrb[6].mxu1 }
 0x5bc   : > { %vm1503_vm4 = vcmp.ge.f32.partialorder %v1849_v50, 0.0  ;;  %v1504_v53 = vmul.f32 0.2, %v1849_v50  ;;  %v1841_v54 = vpop.f32.mrb[7].mxu1 }
 0x5be   : > { %v1505_v55 = vsel %vm1503_vm4, %v1849_v50, %v1504_v53 }
 0x5bf   : > { %v1507_v56 = vmul.f32 %v1506_v1, %v1505_v55 }
 0x5c1   : > { %1843 = vmatpush3.msk.msra.mxu0 %vm1513_vm2, %v1507_v56 }
 0x5c2   : > { %1845 = vmatmul.mubr.msk.f32.vlgmr.msra.gmra.mrb[16].mxu0 %vm1509_vm5, %v1508_v57 }
 0x695   : > { %v1583_v58 = vpop.f32.mrb[16].mxu0 }
 0x696   : > { %v1846_v59 = vpop.f32.mrb[17].mxu0  ;;  %v1587_v60 = vsel %vm527_vm13, %v1583_v58, 0.0 }
 0x697   : > { %1588 = vadd.xlane.f32.xlu0 %v1587_v60 }
 0x724   : > { %v1589_v62 = vpop.xlane.xlu0 %1588 }
 0x725   : > { %v1591_v63 = vadd.f32 %v1590_v61, %v1589_v62 }
 0x727   : > { %1593 = vst.msk [vmem:[%s521_s15] sm:$0x1] %vm1592_vm6, %v1591_v63 }
 0x728 PF: > { %s28_s23 = sadd.s32 1, %s1926_s23  }
 0x729   : > { %p25_p5 = scmp.ge.s32.totalorder %s28_s23, 4  }
 0x72b   :  { %27 = sbr.rel (!%p25_p5) target bundleno = 3 (0x3), region = 127 }

</bundles_post_ra>
